<compile_context>
chip_gen: v7x
topology: tpu7x:2x2x1
jax: 0.10.0
libtpu: 0.0.40
codegen_flags: <defaults>
</compile_context>

<pallas_src>
import functools

import numpy as np
import jax
import jax.numpy as jnp
from jax import lax
from jax.experimental import pallas as pl
from jax.experimental.pallas import tpu as pltpu


_LANES = 128    # batch elements per lane row
_CHUNK = 8      # sublanes per inner-loop step (one dense (8,128) vreg)
_TILE_B = 512   # sublane-rows of batch per grid step (~4.5 MiB inputs/step)
_UNROLL = 8     # partial unroll of the inner chunk loop


def _round_up(x, m):
    return ((x + m - 1) // m) * m


# ----------------------------------------------------------------------------
# In-kernel float32 arccos (Cephes-style: sqrt / mul / add / select only).
# ----------------------------------------------------------------------------
def _asin_core(z):
    zz = z * z
    p = jnp.float32(4.2163199048e-2)
    p = p * zz + jnp.float32(2.4181311049e-2)
    p = p * zz + jnp.float32(4.5470025998e-2)
    p = p * zz + jnp.float32(7.4953002686e-2)
    p = p * zz + jnp.float32(1.6666752422e-1)
    return z + z * zz * p


def _acos(x):
    pi = jnp.float32(np.pi)
    pio2 = jnp.float32(np.pi / 2.0)
    ax = jnp.abs(x)
    z_big = jnp.sqrt(jnp.maximum(0.5 * (1.0 - ax), 0.0))
    acos_abs_big = 2.0 * _asin_core(z_big)
    acos_big = jnp.where(x < 0.0, pi - acos_abs_big, acos_abs_big)
    acos_small = pio2 - _asin_core(x)
    return jnp.where(ax > 0.5, acos_big, acos_small)


def _recip(x):
    """EUP approx reciprocal + one Newton-Raphson refinement step."""
    r = pl.reciprocal(x, approx=True)
    return r * (jnp.float32(2.0) - x * r)


# ----------------------------------------------------------------------------
# Pallas kernel: per-tile sum of squared error between epsilon and SE3.log(T).
#   eps_ref : (6,  TILE_B, 128) f32   twist [rho_xyz, phi_xyz], batch-dense
#   t_ref   : (12, TILE_B, 128) f32   row-major top 3x4 of T, batch-dense
#   out_ref : (1, 8, 128)       f32   per-tile partial sum (reduced in wrapper)
# ----------------------------------------------------------------------------
def _se3_log_sqerr_kernel(eps_ref, t_ref, out_ref):
    tile_b = t_ref.shape[1]
    n_chunks = tile_b // _CHUNK

    one = jnp.float32(1.0)
    half = jnp.float32(0.5)
    two = jnp.float32(2.0)

    def chunk_body(c, acc):
        s = pl.multiple_of(c * _CHUNK, _CHUNK)
        sl = pl.ds(s, _CHUNK)

        r00 = t_ref[0, sl, :]; r01 = t_ref[1, sl, :]; r02 = t_ref[2, sl, :]
        tx = t_ref[3, sl, :]
        r10 = t_ref[4, sl, :]; r11 = t_ref[5, sl, :]; r12 = t_ref[6, sl, :]
        ty = t_ref[7, sl, :]
        r20 = t_ref[8, sl, :]; r21 = t_ref[9, sl, :]; r22 = t_ref[10, sl, :]
        tz = t_ref[11, sl, :]

        # ---- SO3.log ----
        cos_angle = jnp.clip(half * (r00 + r11 + r22) - half, -1.0, 1.0)
        angle = _acos(cos_angle)

        # Half-angle sin/cos from cos_angle; reused for sin(angle) AND for A.
        ch = jnp.sqrt(jnp.maximum(half * (one + cos_angle), 0.0))   # cos(a/2)
        sh = jnp.sqrt(jnp.maximum(half * (one - cos_angle), 0.0))   # sin(a/2)
        sin_angle = two * sh * ch

        # f32 acos is noisy near angle~0; use the series branch generously.
        small = angle < jnp.float32(1e-3)
        # Floor the divisor to guard angle~pi (sin->0 while `small` is False):
        # avoids inf/NaN (the torch reference is singular there as well).
        safe_sin = jnp.maximum(jnp.where(small, one, sin_angle),
                               jnp.float32(1e-7))
        half_inv_sin = half * _recip(safe_sin)

        w0 = r21 - r12
        w1 = r02 - r20
        w2 = r10 - r01

        rot_factor = jnp.where(
            small,
            half + angle * angle * jnp.float32(1.0 / 12.0),
            angle * half_inv_sin)

        phi0 = rot_factor * w0
        phi1 = rot_factor * w1
        phi2 = rot_factor * w2

        # a = phi / angle, computed directly (only consumed on the big branch).
        a0 = half_inv_sin * w0
        a1 = half_inv_sin * w1
        a2 = half_inv_sin * w2

        # ---- rho = SO3.inv_left_jacobian(phi) @ translation ----
        # Jinv = A*I + (1-A) a a^T - (angle/2) hat(a),
        #   A = (angle/2) * cos(angle/2) / sin(angle/2)
        half_angle = half * angle
        safe_sh = jnp.where(small, one, sh)
        A = jnp.where(small,
                      one - angle * angle * jnp.float32(1.0 / 12.0),
                      half_angle * ch * _recip(safe_sh))

        a_dot_t = a0 * tx + a1 * ty + a2 * tz
        s_aat = (one - A) * a_dot_t
        cx = a1 * tz - a2 * ty
        cy = a2 * tx - a0 * tz
        cz = a0 * ty - a1 * tx

        rho0_big = A * tx + a0 * s_aat - half_angle * cx
        rho1_big = A * ty + a1 * s_aat - half_angle * cy
        rho2_big = A * tz + a2 * s_aat - half_angle * cz

        # Small angle: Jinv ~= I - 0.5*hat(phi) => rho = t - 0.5*cross(phi, t)
        rho0_small = tx - half * (phi1 * tz - phi2 * ty)
        rho1_small = ty - half * (phi2 * tx - phi0 * tz)
        rho2_small = tz - half * (phi0 * ty - phi1 * tx)

        rho0 = jnp.where(small, rho0_small, rho0_big)
        rho1 = jnp.where(small, rho1_small, rho1_big)
        rho2 = jnp.where(small, rho2_small, rho2_big)

        # ---- squared error against epsilon = [rho, phi] ----
        d0 = eps_ref[0, sl, :] - rho0
        d1 = eps_ref[1, sl, :] - rho1
        d2 = eps_ref[2, sl, :] - rho2
        d3 = eps_ref[3, sl, :] - phi0
        d4 = eps_ref[4, sl, :] - phi1
        d5 = eps_ref[5, sl, :] - phi2

        sq = d0 * d0 + d1 * d1 + d2 * d2 + d3 * d3 + d4 * d4 + d5 * d5
        return acc + sq

    acc0 = jnp.zeros((_CHUNK, _LANES), jnp.float32)
    acc = lax.fori_loop(0, n_chunks, chunk_body, acc0,
                        unroll=min(_UNROLL, n_chunks))
    out_ref[0] = acc


# ----------------------------------------------------------------------------
# Wrapper: single fusable layout pass (cast + slice + transpose + zero-pad),
# tiled pallas_call with per-tile partial sums, mean over the TRUE N*6.
# ----------------------------------------------------------------------------
@functools.partial(jax.jit, static_argnames=("use_Transformation",))
def transformation_loss(points_1, epsilon_1, T2_1, use_Transformation=True):
    if not use_Transformation:
        # TODO(synk): My_SE3.exp is undefined in the source module; branch not implemented.
        raise NotImplementedError("use_Transformation=False branch not implemented")

    del points_1  # reshaped but unused in this branch of the reference code

    eps = epsilon_1.reshape(-1, epsilon_1.shape[-1]).astype(jnp.float32)  # (N, 6)
    n = eps.shape[0]

    # Drop the constant bottom row: only the top 3x4 (12 components) is shipped.
    t12 = T2_1.reshape(-1, 4, 4)[:, :3, :].reshape(n, 12).astype(jnp.float32)

    nb = pl.cdiv(n, _LANES)
    # Cap the tile so num_tiles >= 2 whenever the batch allows it (v7x has two
    # TensorCores sharing the "parallel" grid axis); otherwise use the biggest
    # tile that fits.
    tile_b = min(_TILE_B, _round_up(max(pl.cdiv(nb, 2), 1), _CHUNK))
    nb_pad = _round_up(nb, tile_b)
    n_pad = nb_pad * _LANES
    num_tiles = nb_pad // tile_b
    pad = n_pad - n

    # Single layout pass to the batch-dense component-major layout.  Zero
    # padding rows (R=0, t=0, eps=0) hit no singular branch and contribute
    # exactly 0 to the loss, so no in-kernel masking is required and the
    # cast + slice + transpose + pad + reshape fuse into one pass.
    eps_cm = jnp.pad(eps.T, ((0, 0), (0, pad))).reshape(6, nb_pad, _LANES)
    t_cm = jnp.pad(t12.T, ((0, 0), (0, pad))).reshape(12, nb_pad, _LANES)

    partial = pl.pallas_call(
        _se3_log_sqerr_kernel,
        out_shape=jax.ShapeDtypeStruct((num_tiles, _CHUNK, _LANES), jnp.float32),
        grid=(num_tiles,),
        in_specs=[
            pl.BlockSpec((6, tile_b, _LANES), lambda i: (0, i, 0)),
            pl.BlockSpec((12, tile_b, _LANES), lambda i: (0, i, 0)),
        ],
        out_specs=pl.BlockSpec((1, _CHUNK, _LANES), lambda i: (i, 0, 0)),
        compiler_params=pltpu.CompilerParams(
            dimension_semantics=("parallel",),
            vmem_limit_bytes=32 * 1024 * 1024),
    )(eps_cm, t_cm)

    # Mean over the TRUE N*6 elements (not the padded count).
    return jnp.sum(partial) / jnp.float32(n * 6)


# ----------------------------------------------------------------------------
# Pure-JAX reference (angles kept away from 0 / pi in the tests).
# ----------------------------------------------------------------------------
def _hat(v):
    x, y, z = v[:, 0], v[:, 1], v[:, 2]
    zero = jnp.zeros_like(x)
    return jnp.stack([
        jnp.stack([zero, -z, y], -1),
        jnp.stack([z, zero, -x], -1),
        jnp.stack([-y, x, zero], -1)], axis=1)


def _ref_loss(epsilon_1, T2_1):
    eps = epsilon_1.reshape(-1, epsilon_1.shape[-1]).astype(jnp.float32)
    T2 = T2_1.reshape(-1, 4, 4).astype(jnp.float32)
    R = T2[:, :3, :3]
    t = T2[:, :3, 3]
    c = jnp.clip(0.5 * (R[:, 0, 0] + R[:, 1, 1] + R[:, 2, 2]) - 0.5, -1.0, 1.0)
    angle = jnp.arccos(c)
    fac = 0.5 * angle / jnp.sin(angle)
    phi = fac[:, None] * jnp.stack(
        [R[:, 2, 1] - R[:, 1, 2], R[:, 0, 2] - R[:, 2, 0], R[:, 1, 0] - R[:, 0, 1]],
        axis=-1)
    a = phi / angle[:, None]
    half = 0.5 * angle
    A = half / jnp.tan(half)
    eye = jnp.eye(3, dtype=jnp.float32)[None]
    aaT = a[:, :, None] * a[:, None, :]
    Jinv = (A[:, None, None] * eye + (1.0 - A)[:, None, None] * aaT
            - half[:, None, None] * _hat(a))
    rho = jnp.einsum('nij,nj->ni', Jinv, t)
    gt = jnp.concatenate([rho, phi], axis=-1)
    return jnp.mean((eps - gt) ** 2)


def _make_inputs(key, batch, group):
    n = batch * group
    k_axis, k_ang, k_tr, k_eps, k_pts = jax.random.split(key, 5)
    axis = jax.random.normal(k_axis, (n, 3), dtype=jnp.float32)
    axis = axis / jnp.linalg.norm(axis, axis=-1, keepdims=True)
    angle = jax.random.uniform(k_ang, (n, 1), minval=0.2, maxval=2.5,
                               dtype=jnp.float32)
    K = _hat(axis)
    eye = jnp.eye(3, dtype=jnp.float32)[None]
    R = (eye + jnp.sin(angle)[..., None] * K
         + (1.0 - jnp.cos(angle))[..., None] * (K @ K))
    trans = jax.random.normal(k_tr, (n, 3), dtype=jnp.float32)
    top = jnp.concatenate([R, trans[:, :, None]], axis=2)               # (n,3,4)
    bottom = jnp.tile(jnp.array([[[0.0, 0.0, 0.0, 1.0]]], jnp.float32), (n, 1, 1))
    T2_1 = jnp.concatenate([top, bottom], axis=1).reshape(batch, group, 4, 4)
    epsilon_1 = jax.random.normal(k_eps, (batch, group, 6), dtype=jnp.float32)
    points_1 = jax.random.normal(k_pts, (batch, group, 3), dtype=jnp.float32)
    return points_1, epsilon_1, T2_1


if __name__ == "__main__":
    key = jax.random.PRNGKey(0)
    k_small, k_big = jax.random.split(key)

    # Small shapes implied by the module: (B, G, 6) twists, (B, G, 4, 4) SE3.
    points_1, epsilon_1, T2_1 = _make_inputs(k_small, 2, 8)
    loss = jax.block_until_ready(
        transformation_loss(points_1, epsilon_1, T2_1, use_Transformation=True))
    ref = jax.block_until_ready(_ref_loss(epsilon_1, T2_1))
    assert np.isfinite(float(loss))
    np.testing.assert_allclose(float(loss), float(ref), rtol=1e-2, atol=1e-3)

    # Second shape large enough to exercise multiple grid tiles AND padding.
    points_b, epsilon_b, T2_b = _make_inputs(k_big, 2, 16000)   # N = 32000
    loss_b = jax.block_until_ready(
        transformation_loss(points_b, epsilon_b, T2_b, use_Transformation=True))
    ref_b = jax.block_until_ready(_ref_loss(epsilon_b, T2_b))
    assert np.isfinite(float(loss_b))
    np.testing.assert_allclose(float(loss_b), float(ref_b), rtol=1e-2, atol=1e-3)

    print("KERNEL_OK")
</pallas_src>

<mosaic_0001>
module attributes {stable_mosaic.version = 11 : i64} {
  func.func @_se3_log_sqerr_kernel(%arg0: i32, %arg1: memref<6x8x128xf32, #tpu.memory_space<vmem>>, %arg2: memref<12x8x128xf32, #tpu.memory_space<vmem>>, %arg3: memref<1x8x128xf32, #tpu.memory_space<vmem>>) attributes {dimension_semantics = [#tpu.dimension_semantics<parallel>], iteration_bounds = array<i64: 1>, scalar_prefetch = 0 : i64, scratch_operands = 0 : i64, tpu.core_type = #tpu.core_type<tc>, window_params = [{transform_indices = @transform_0, window_bounds = array<i64: 6, 8, 128>}, {transform_indices = @transform_1, window_bounds = array<i64: 12, 8, 128>}, {transform_indices = @transform_2, window_bounds = array<i64: 1, 8, 128>}]} {
    %cst = arith.constant 0.000000e+00 : f32
    %0 = vector.broadcast %cst : f32 to vector<8x128xf32>
    %cst_0 = arith.constant 5.000000e-01 : f32
    %cst_1 = arith.constant 1.000000e+00 : f32
    %cst_2 = arith.constant 2.000000e+00 : f32
    %c0_i32 = arith.constant 0 : i32
    %c8_i32 = arith.constant 8 : i32
    %1 = arith.muli %c0_i32, %c8_i32 : i32
    %2 = tpu.assume_multiple %1, 8 : i32
    %c0 = arith.constant 0 : index
    %3 = arith.index_cast %2 : i32 to index
    %c0_3 = arith.constant 0 : index
    %4 = vector.load %arg2[%c0, %3, %c0_3] : memref<12x8x128xf32, #tpu.memory_space<vmem>>, vector<1x8x128xf32>
    %5 = vector.shape_cast %4 : vector<1x8x128xf32> to vector<8x128xf32>
    %c1 = arith.constant 1 : index
    %6 = arith.index_cast %2 : i32 to index
    %c0_4 = arith.constant 0 : index
    %7 = vector.load %arg2[%c1, %6, %c0_4] : memref<12x8x128xf32, #tpu.memory_space<vmem>>, vector<1x8x128xf32>
    %8 = vector.shape_cast %7 : vector<1x8x128xf32> to vector<8x128xf32>
    %c2 = arith.constant 2 : index
    %9 = arith.index_cast %2 : i32 to index
    %c0_5 = arith.constant 0 : index
    %10 = vector.load %arg2[%c2, %9, %c0_5] : memref<12x8x128xf32, #tpu.memory_space<vmem>>, vector<1x8x128xf32>
    %11 = vector.shape_cast %10 : vector<1x8x128xf32> to vector<8x128xf32>
    %c3 = arith.constant 3 : index
    %12 = arith.index_cast %2 : i32 to index
    %c0_6 = arith.constant 0 : index
    %13 = vector.load %arg2[%c3, %12, %c0_6] : memref<12x8x128xf32, #tpu.memory_space<vmem>>, vector<1x8x128xf32>
    %14 = vector.shape_cast %13 : vector<1x8x128xf32> to vector<8x128xf32>
    %c4 = arith.constant 4 : index
    %15 = arith.index_cast %2 : i32 to index
    %c0_7 = arith.constant 0 : index
    %16 = vector.load %arg2[%c4, %15, %c0_7] : memref<12x8x128xf32, #tpu.memory_space<vmem>>, vector<1x8x128xf32>
    %17 = vector.shape_cast %16 : vector<1x8x128xf32> to vector<8x128xf32>
    %c5 = arith.constant 5 : index
    %18 = arith.index_cast %2 : i32 to index
    %c0_8 = arith.constant 0 : index
    %19 = vector.load %arg2[%c5, %18, %c0_8] : memref<12x8x128xf32, #tpu.memory_space<vmem>>, vector<1x8x128xf32>
    %20 = vector.shape_cast %19 : vector<1x8x128xf32> to vector<8x128xf32>
    %c6 = arith.constant 6 : index
    %21 = arith.index_cast %2 : i32 to index
    %c0_9 = arith.constant 0 : index
    %22 = vector.load %arg2[%c6, %21, %c0_9] : memref<12x8x128xf32, #tpu.memory_space<vmem>>, vector<1x8x128xf32>
    %23 = vector.shape_cast %22 : vector<1x8x128xf32> to vector<8x128xf32>
    %c7 = arith.constant 7 : index
    %24 = arith.index_cast %2 : i32 to index
    %c0_10 = arith.constant 0 : index
    %25 = vector.load %arg2[%c7, %24, %c0_10] : memref<12x8x128xf32, #tpu.memory_space<vmem>>, vector<1x8x128xf32>
    %26 = vector.shape_cast %25 : vector<1x8x128xf32> to vector<8x128xf32>
    %c8 = arith.constant 8 : index
    %27 = arith.index_cast %2 : i32 to index
    %c0_11 = arith.constant 0 : index
    %28 = vector.load %arg2[%c8, %27, %c0_11] : memref<12x8x128xf32, #tpu.memory_space<vmem>>, vector<1x8x128xf32>
    %29 = vector.shape_cast %28 : vector<1x8x128xf32> to vector<8x128xf32>
    %c9 = arith.constant 9 : index
    %30 = arith.index_cast %2 : i32 to index
    %c0_12 = arith.constant 0 : index
    %31 = vector.load %arg2[%c9, %30, %c0_12] : memref<12x8x128xf32, #tpu.memory_space<vmem>>, vector<1x8x128xf32>
    %32 = vector.shape_cast %31 : vector<1x8x128xf32> to vector<8x128xf32>
    %c10 = arith.constant 10 : index
    %33 = arith.index_cast %2 : i32 to index
    %c0_13 = arith.constant 0 : index
    %34 = vector.load %arg2[%c10, %33, %c0_13] : memref<12x8x128xf32, #tpu.memory_space<vmem>>, vector<1x8x128xf32>
    %35 = vector.shape_cast %34 : vector<1x8x128xf32> to vector<8x128xf32>
    %c11 = arith.constant 11 : index
    %36 = arith.index_cast %2 : i32 to index
    %c0_14 = arith.constant 0 : index
    %37 = vector.load %arg2[%c11, %36, %c0_14] : memref<12x8x128xf32, #tpu.memory_space<vmem>>, vector<1x8x128xf32>
    %38 = vector.shape_cast %37 : vector<1x8x128xf32> to vector<8x128xf32>
    %39 = arith.addf %5, %20 : vector<8x128xf32>
    %40 = arith.addf %39, %35 : vector<8x128xf32>
    %41 = vector.broadcast %cst_0 : f32 to vector<8x128xf32>
    %42 = arith.mulf %41, %40 : vector<8x128xf32>
    %43 = vector.broadcast %cst_0 : f32 to vector<8x128xf32>
    %44 = arith.subf %42, %43 : vector<8x128xf32>
    %cst_15 = arith.constant -1.000000e+00 : f32
    %cst_16 = arith.constant 1.000000e+00 : f32
    %45 = vector.broadcast %cst_15 : f32 to vector<8x128xf32>
    %46 = arith.maximumf %45, %44 : vector<8x128xf32>
    %47 = vector.broadcast %cst_16 : f32 to vector<8x128xf32>
    %48 = arith.minimumf %47, %46 : vector<8x128xf32>
    %49 = math.absf %48 : vector<8x128xf32>
    %cst_17 = arith.constant 1.000000e+00 : f32
    %50 = vector.broadcast %cst_17 : f32 to vector<8x128xf32>
    %51 = arith.subf %50, %49 : vector<8x128xf32>
    %cst_18 = arith.constant 5.000000e-01 : f32
    %52 = vector.broadcast %cst_18 : f32 to vector<8x128xf32>
    %53 = arith.mulf %52, %51 : vector<8x128xf32>
    %cst_19 = arith.constant 0.000000e+00 : f32
    %54 = vector.broadcast %cst_19 : f32 to vector<8x128xf32>
    %55 = arith.maximumf %53, %54 : vector<8x128xf32>
    %56 = math.sqrt %55 : vector<8x128xf32>
    %57 = arith.mulf %56, %56 : vector<8x128xf32>
    %cst_20 = arith.constant 4.216320e-02 : f32
    %58 = vector.broadcast %cst_20 : f32 to vector<8x128xf32>
    %59 = arith.mulf %58, %57 : vector<8x128xf32>
    %cst_21 = arith.constant 0.024181312 : f32
    %60 = vector.broadcast %cst_21 : f32 to vector<8x128xf32>
    %61 = arith.addf %59, %60 : vector<8x128xf32>
    %62 = arith.mulf %61, %57 : vector<8x128xf32>
    %cst_22 = arith.constant 0.0454700254 : f32
    %63 = vector.broadcast %cst_22 : f32 to vector<8x128xf32>
    %64 = arith.addf %62, %63 : vector<8x128xf32>
    %65 = arith.mulf %64, %57 : vector<8x128xf32>
    %cst_23 = arith.constant 0.0749530047 : f32
    %66 = vector.broadcast %cst_23 : f32 to vector<8x128xf32>
    %67 = arith.addf %65, %66 : vector<8x128xf32>
    %68 = arith.mulf %67, %57 : vector<8x128xf32>
    %cst_24 = arith.constant 0.166667521 : f32
    %69 = vector.broadcast %cst_24 : f32 to vector<8x128xf32>
    %70 = arith.addf %68, %69 : vector<8x128xf32>
    %71 = arith.mulf %56, %57 : vector<8x128xf32>
    %72 = arith.mulf %71, %70 : vector<8x128xf32>
    %73 = arith.addf %56, %72 : vector<8x128xf32>
    %cst_25 = arith.constant 2.000000e+00 : f32
    %74 = vector.broadcast %cst_25 : f32 to vector<8x128xf32>
    %75 = arith.mulf %74, %73 : vector<8x128xf32>
    %cst_26 = arith.constant 0.000000e+00 : f32
    %76 = vector.broadcast %cst_26 : f32 to vector<8x128xf32>
    %77 = arith.cmpf olt, %48, %76 : vector<8x128xf32>
    %cst_27 = arith.constant 3.14159274 : f32
    %78 = vector.broadcast %cst_27 : f32 to vector<8x128xf32>
    %79 = arith.subf %78, %75 : vector<8x128xf32>
    %80 = arith.select %77, %79, %75 : vector<8x128xi1>, vector<8x128xf32>
    %81 = arith.mulf %48, %48 : vector<8x128xf32>
    %cst_28 = arith.constant 4.216320e-02 : f32
    %82 = vector.broadcast %cst_28 : f32 to vector<8x128xf32>
    %83 = arith.mulf %82, %81 : vector<8x128xf32>
    %cst_29 = arith.constant 0.024181312 : f32
    %84 = vector.broadcast %cst_29 : f32 to vector<8x128xf32>
    %85 = arith.addf %83, %84 : vector<8x128xf32>
    %86 = arith.mulf %85, %81 : vector<8x128xf32>
    %cst_30 = arith.constant 0.0454700254 : f32
    %87 = vector.broadcast %cst_30 : f32 to vector<8x128xf32>
    %88 = arith.addf %86, %87 : vector<8x128xf32>
    %89 = arith.mulf %88, %81 : vector<8x128xf32>
    %cst_31 = arith.constant 0.0749530047 : f32
    %90 = vector.broadcast %cst_31 : f32 to vector<8x128xf32>
    %91 = arith.addf %89, %90 : vector<8x128xf32>
    %92 = arith.mulf %91, %81 : vector<8x128xf32>
    %cst_32 = arith.constant 0.166667521 : f32
    %93 = vector.broadcast %cst_32 : f32 to vector<8x128xf32>
    %94 = arith.addf %92, %93 : vector<8x128xf32>
    %95 = arith.mulf %48, %81 : vector<8x128xf32>
    %96 = arith.mulf %95, %94 : vector<8x128xf32>
    %97 = arith.addf %48, %96 : vector<8x128xf32>
    %cst_33 = arith.constant 1.57079637 : f32
    %98 = vector.broadcast %cst_33 : f32 to vector<8x128xf32>
    %99 = arith.subf %98, %97 : vector<8x128xf32>
    %cst_34 = arith.constant 5.000000e-01 : f32
    %100 = vector.broadcast %cst_34 : f32 to vector<8x128xf32>
    %101 = arith.cmpf ogt, %49, %100 : vector<8x128xf32>
    %102 = arith.select %101, %80, %99 : vector<8x128xi1>, vector<8x128xf32>
    %103 = vector.broadcast %cst_1 : f32 to vector<8x128xf32>
    %104 = arith.addf %103, %48 : vector<8x128xf32>
    %105 = vector.broadcast %cst_0 : f32 to vector<8x128xf32>
    %106 = arith.mulf %105, %104 : vector<8x128xf32>
    %cst_35 = arith.constant 0.000000e+00 : f32
    %107 = vector.broadcast %cst_35 : f32 to vector<8x128xf32>
    %108 = arith.maximumf %106, %107 : vector<8x128xf32>
    %109 = math.sqrt %108 : vector<8x128xf32>
    %110 = vector.broadcast %cst_1 : f32 to vector<8x128xf32>
    %111 = arith.subf %110, %48 : vector<8x128xf32>
    %112 = vector.broadcast %cst_0 : f32 to vector<8x128xf32>
    %113 = arith.mulf %112, %111 : vector<8x128xf32>
    %cst_36 = arith.constant 0.000000e+00 : f32
    %114 = vector.broadcast %cst_36 : f32 to vector<8x128xf32>
    %115 = arith.maximumf %113, %114 : vector<8x128xf32>
    %116 = math.sqrt %115 : vector<8x128xf32>
    %117 = vector.broadcast %cst_2 : f32 to vector<8x128xf32>
    %118 = arith.mulf %117, %116 : vector<8x128xf32>
    %119 = arith.mulf %118, %109 : vector<8x128xf32>
    %cst_37 = arith.constant 1.000000e-03 : f32
    %120 = vector.broadcast %cst_37 : f32 to vector<8x128xf32>
    %121 = arith.cmpf olt, %102, %120 : vector<8x128xf32>
    %122 = vector.broadcast %cst_1 : f32 to vector<8x128xf32>
    %123 = arith.select %121, %122, %119 : vector<8x128xi1>, vector<8x128xf32>
    %cst_38 = arith.constant 1.000000e-07 : f32
    %124 = vector.broadcast %cst_38 : f32 to vector<8x128xf32>
    %125 = arith.maximumf %123, %124 : vector<8x128xf32>
    %126 = tpu.reciprocal %125 {approx = true} : vector<8x128xf32> -> vector<8x128xf32>
    %127 = arith.mulf %125, %126 : vector<8x128xf32>
    %cst_39 = arith.constant 2.000000e+00 : f32
    %128 = vector.broadcast %cst_39 : f32 to vector<8x128xf32>
    %129 = arith.subf %128, %127 : vector<8x128xf32>
    %130 = arith.mulf %126, %129 : vector<8x128xf32>
    %131 = vector.broadcast %cst_0 : f32 to vector<8x128xf32>
    %132 = arith.mulf %131, %130 : vector<8x128xf32>
    %133 = arith.subf %32, %23 : vector<8x128xf32>
    %134 = arith.subf %11, %29 : vector<8x128xf32>
    %135 = arith.subf %17, %8 : vector<8x128xf32>
    %136 = arith.mulf %102, %102 : vector<8x128xf32>
    %cst_40 = arith.constant 0.0833333358 : f32
    %137 = vector.broadcast %cst_40 : f32 to vector<8x128xf32>
    %138 = arith.mulf %136, %137 : vector<8x128xf32>
    %139 = vector.broadcast %cst_0 : f32 to vector<8x128xf32>
    %140 = arith.addf %139, %138 : vector<8x128xf32>
    %141 = arith.mulf %102, %132 : vector<8x128xf32>
    %142 = arith.select %121, %140, %141 : vector<8x128xi1>, vector<8x128xf32>
    %143 = arith.mulf %142, %133 : vector<8x128xf32>
    %144 = arith.mulf %142, %134 : vector<8x128xf32>
    %145 = arith.mulf %142, %135 : vector<8x128xf32>
    %146 = arith.mulf %132, %133 : vector<8x128xf32>
    %147 = arith.mulf %132, %134 : vector<8x128xf32>
    %148 = arith.mulf %132, %135 : vector<8x128xf32>
    %149 = vector.broadcast %cst_0 : f32 to vector<8x128xf32>
    %150 = arith.mulf %149, %102 : vector<8x128xf32>
    %151 = vector.broadcast %cst_1 : f32 to vector<8x128xf32>
    %152 = arith.select %121, %151, %116 : vector<8x128xi1>, vector<8x128xf32>
    %153 = arith.mulf %102, %102 : vector<8x128xf32>
    %cst_41 = arith.constant 0.0833333358 : f32
    %154 = vector.broadcast %cst_41 : f32 to vector<8x128xf32>
    %155 = arith.mulf %153, %154 : vector<8x128xf32>
    %156 = vector.broadcast %cst_1 : f32 to vector<8x128xf32>
    %157 = arith.subf %156, %155 : vector<8x128xf32>
    %158 = arith.mulf %150, %109 : vector<8x128xf32>
    %159 = tpu.reciprocal %152 {approx = true} : vector<8x128xf32> -> vector<8x128xf32>
    %160 = arith.mulf %152, %159 : vector<8x128xf32>
    %cst_42 = arith.constant 2.000000e+00 : f32
    %161 = vector.broadcast %cst_42 : f32 to vector<8x128xf32>
    %162 = arith.subf %161, %160 : vector<8x128xf32>
    %163 = arith.mulf %159, %162 : vector<8x128xf32>
    %164 = arith.mulf %158, %163 : vector<8x128xf32>
    %165 = arith.select %121, %157, %164 : vector<8x128xi1>, vector<8x128xf32>
    %166 = arith.mulf %146, %14 : vector<8x128xf32>
    %167 = arith.mulf %147, %26 : vector<8x128xf32>
    %168 = arith.addf %166, %167 : vector<8x128xf32>
    %169 = arith.mulf %148, %38 : vector<8x128xf32>
    %170 = arith.addf %168, %169 : vector<8x128xf32>
    %171 = vector.broadcast %cst_1 : f32 to vector<8x128xf32>
    %172 = arith.subf %171, %165 : vector<8x128xf32>
    %173 = arith.mulf %172, %170 : vector<8x128xf32>
    %174 = arith.mulf %147, %38 : vector<8x128xf32>
    %175 = arith.mulf %148, %26 : vector<8x128xf32>
    %176 = arith.subf %174, %175 : vector<8x128xf32>
    %177 = arith.mulf %148, %14 : vector<8x128xf32>
    %178 = arith.mulf %146, %38 : vector<8x128xf32>
    %179 = arith.subf %177, %178 : vector<8x128xf32>
    %180 = arith.mulf %146, %26 : vector<8x128xf32>
    %181 = arith.mulf %147, %14 : vector<8x128xf32>
    %182 = arith.subf %180, %181 : vector<8x128xf32>
    %183 = arith.mulf %165, %14 : vector<8x128xf32>
    %184 = arith.mulf %146, %173 : vector<8x128xf32>
    %185 = arith.addf %183, %184 : vector<8x128xf32>
    %186 = arith.mulf %150, %176 : vector<8x128xf32>
    %187 = arith.subf %185, %186 : vector<8x128xf32>
    %188 = arith.mulf %165, %26 : vector<8x128xf32>
    %189 = arith.mulf %147, %173 : vector<8x128xf32>
    %190 = arith.addf %188, %189 : vector<8x128xf32>
    %191 = arith.mulf %150, %179 : vector<8x128xf32>
    %192 = arith.subf %190, %191 : vector<8x128xf32>
    %193 = arith.mulf %165, %38 : vector<8x128xf32>
    %194 = arith.mulf %148, %173 : vector<8x128xf32>
    %195 = arith.addf %193, %194 : vector<8x128xf32>
    %196 = arith.mulf %150, %182 : vector<8x128xf32>
    %197 = arith.subf %195, %196 : vector<8x128xf32>
    %198 = arith.mulf %144, %38 : vector<8x128xf32>
    %199 = arith.mulf %145, %26 : vector<8x128xf32>
    %200 = arith.subf %198, %199 : vector<8x128xf32>
    %201 = vector.broadcast %cst_0 : f32 to vector<8x128xf32>
    %202 = arith.mulf %201, %200 : vector<8x128xf32>
    %203 = arith.subf %14, %202 : vector<8x128xf32>
    %204 = arith.mulf %145, %14 : vector<8x128xf32>
    %205 = arith.mulf %143, %38 : vector<8x128xf32>
    %206 = arith.subf %204, %205 : vector<8x128xf32>
    %207 = vector.broadcast %cst_0 : f32 to vector<8x128xf32>
    %208 = arith.mulf %207, %206 : vector<8x128xf32>
    %209 = arith.subf %26, %208 : vector<8x128xf32>
    %210 = arith.mulf %143, %26 : vector<8x128xf32>
    %211 = arith.mulf %144, %14 : vector<8x128xf32>
    %212 = arith.subf %210, %211 : vector<8x128xf32>
    %213 = vector.broadcast %cst_0 : f32 to vector<8x128xf32>
    %214 = arith.mulf %213, %212 : vector<8x128xf32>
    %215 = arith.subf %38, %214 : vector<8x128xf32>
    %216 = arith.select %121, %203, %187 : vector<8x128xi1>, vector<8x128xf32>
    %217 = arith.select %121, %209, %192 : vector<8x128xi1>, vector<8x128xf32>
    %218 = arith.select %121, %215, %197 : vector<8x128xi1>, vector<8x128xf32>
    %c0_43 = arith.constant 0 : index
    %219 = arith.index_cast %2 : i32 to index
    %c0_44 = arith.constant 0 : index
    %220 = vector.load %arg1[%c0_43, %219, %c0_44] : memref<6x8x128xf32, #tpu.memory_space<vmem>>, vector<1x8x128xf32>
    %221 = vector.shape_cast %220 : vector<1x8x128xf32> to vector<8x128xf32>
    %222 = arith.subf %221, %216 : vector<8x128xf32>
    %c1_45 = arith.constant 1 : index
    %223 = arith.index_cast %2 : i32 to index
    %c0_46 = arith.constant 0 : index
    %224 = vector.load %arg1[%c1_45, %223, %c0_46] : memref<6x8x128xf32, #tpu.memory_space<vmem>>, vector<1x8x128xf32>
    %225 = vector.shape_cast %224 : vector<1x8x128xf32> to vector<8x128xf32>
    %226 = arith.subf %225, %217 : vector<8x128xf32>
    %c2_47 = arith.constant 2 : index
    %227 = arith.index_cast %2 : i32 to index
    %c0_48 = arith.constant 0 : index
    %228 = vector.load %arg1[%c2_47, %227, %c0_48] : memref<6x8x128xf32, #tpu.memory_space<vmem>>, vector<1x8x128xf32>
    %229 = vector.shape_cast %228 : vector<1x8x128xf32> to vector<8x128xf32>
    %230 = arith.subf %229, %218 : vector<8x128xf32>
    %c3_49 = arith.constant 3 : index
    %231 = arith.index_cast %2 : i32 to index
    %c0_50 = arith.constant 0 : index
    %232 = vector.load %arg1[%c3_49, %231, %c0_50] : memref<6x8x128xf32, #tpu.memory_space<vmem>>, vector<1x8x128xf32>
    %233 = vector.shape_cast %232 : vector<1x8x128xf32> to vector<8x128xf32>
    %234 = arith.subf %233, %143 : vector<8x128xf32>
    %c4_51 = arith.constant 4 : index
    %235 = arith.index_cast %2 : i32 to index
    %c0_52 = arith.constant 0 : index
    %236 = vector.load %arg1[%c4_51, %235, %c0_52] : memref<6x8x128xf32, #tpu.memory_space<vmem>>, vector<1x8x128xf32>
    %237 = vector.shape_cast %236 : vector<1x8x128xf32> to vector<8x128xf32>
    %238 = arith.subf %237, %144 : vector<8x128xf32>
    %c5_53 = arith.constant 5 : index
    %239 = arith.index_cast %2 : i32 to index
    %c0_54 = arith.constant 0 : index
    %240 = vector.load %arg1[%c5_53, %239, %c0_54] : memref<6x8x128xf32, #tpu.memory_space<vmem>>, vector<1x8x128xf32>
    %241 = vector.shape_cast %240 : vector<1x8x128xf32> to vector<8x128xf32>
    %242 = arith.subf %241, %145 : vector<8x128xf32>
    %243 = arith.mulf %222, %222 : vector<8x128xf32>
    %244 = arith.mulf %226, %226 : vector<8x128xf32>
    %245 = arith.addf %243, %244 : vector<8x128xf32>
    %246 = arith.mulf %230, %230 : vector<8x128xf32>
    %247 = arith.addf %245, %246 : vector<8x128xf32>
    %248 = arith.mulf %234, %234 : vector<8x128xf32>
    %249 = arith.addf %247, %248 : vector<8x128xf32>
    %250 = arith.mulf %238, %238 : vector<8x128xf32>
    %251 = arith.addf %249, %250 : vector<8x128xf32>
    %252 = arith.mulf %242, %242 : vector<8x128xf32>
    %253 = arith.addf %251, %252 : vector<8x128xf32>
    %254 = arith.addf %0, %253 : vector<8x128xf32>
    %c1_i32 = arith.constant 1 : i32
    %c0_55 = arith.constant 0 : index
    %c0_56 = arith.constant 0 : index
    %c0_57 = arith.constant 0 : index
    %255 = vector.load %arg3[%c0_55, %c0_56, %c0_57] : memref<1x8x128xf32, #tpu.memory_space<vmem>>, vector<1x8x128xf32>
    %256 = vector.shape_cast %255 : vector<1x8x128xf32> to vector<8x128xf32>
    %257 = vector.shape_cast %254 : vector<8x128xf32> to vector<1x8x128xf32>
    tpu.vector_store %arg3[%c0_55, %c0_56, %c0_57], %257 {strides = array<i32>} : memref<1x8x128xf32, #tpu.memory_space<vmem>>, vector<1x8x128xf32>,
    return
  }
  func.func @transform_0(%arg0: i32) -> (i32, i32, i32) {
    %c0_i32 = arith.constant 0 : i32
    %c0_i32_0 = arith.constant 0 : i32
    %c0_i32_1 = arith.constant 0 : i32
    return %c0_i32, %arg0, %c0_i32_0 : i32, i32, i32
  }
  func.func @transform_1(%arg0: i32) -> (i32, i32, i32) {
    %c0_i32 = arith.constant 0 : i32
    %c0_i32_0 = arith.constant 0 : i32
    %c0_i32_1 = arith.constant 0 : i32
    return %c0_i32, %arg0, %c0_i32_0 : i32, i32, i32
  }
  func.func @transform_2(%arg0: i32) -> (i32, i32, i32) {
    %c0_i32 = arith.constant 0 : i32
    %c0_i32_0 = arith.constant 0 : i32
    %c0_i32_1 = arith.constant 0 : i32
    return %arg0, %c0_i32, %c0_i32_0 : i32, i32, i32
  }
}

</mosaic_0001>

<bundles_post_ra>
// kernel: transformation_loss.1
= control target key start
LH: loop header
LB: loop body
LE: loop exit
PB: predicated region body
PF: predicated region fallthrough
CT: control target
= control target key end

     0   :  { %s410_s1 = inlined_call_operand.vmem [shape: f32[12,8,128], index: 1, kind: input, shape index: {}]   ;;  %s411_s0 = inlined_call_operand.vmem [shape: f32[6,8,128], index: 0, kind: input, shape index: {}]   ;;  %s412_s2 = inlined_call_operand.vmem [shape: f32[1,8,128], index: 2, kind: output, shape index: {}]  }
   0x1   :  { %v11_v0 = vld [vmem:[%s410_s1] sm:$0xff]  ;;  %v250_v1 = vld [vmem:[%s410_s1 + $0x28] sm:$0xff]  ;;  %v255_v3 = vld [vmem:[%s410_s1 + $0x50] sm:$0xff] }
   0x2   :  { %v45_v2 = vadd.f32 %v250_v1, %v11_v0 }
   0x4   :  { %v46_v4 = vadd.f32 %v255_v3, %v45_v2 }
   0x6   :  { %v47_v5 = vmul.f32 0.5, %v46_v4 }
   0x8   :  { %v257_v6 = vadd.f32 -0.5, %v47_v5 }
   0xa   :  { %v298_v7 = vclamps-f32 %v257_v6, 1.0 }
   0xc   :  { %v51_v8 = vand.u32 2147483647, %v298_v7  ;;  %v78_v10 = vmul.f32 %v298_v7, %v298_v7  ;;  %v103_v14 = vsub.f32 1.0, %v298_v7  ;;  %v93_v16 = vadd.f32 1.0, %v298_v7 }
   0xd   :  { %vm75_vm6 = vcmp.lt.f32.partialorder %v298_v7, 0.0 }
   0xe   :  { %v52_v9 = vsub.f32 1.0, %v51_v8  ;;  %v79_v13 = vmul.f32 0.0421632, %v78_v10  ;;  %v104_v17 = vmul.f32 0.5, %v103_v14  ;;  %v94_v19 = vmul.f32 0.5, %v93_v16  ;;  %v253_v16 = vld [vmem:[%s410_s1 + $0x40] sm:$0xff] }
   0xf   :  { %v87_v39 = vmul.f32 %v298_v7, %v78_v10  ;;  %vm91_vm7 = vcmp.gt.f32.partialorder %v51_v8, 0.5 }
  0x10   :  { %v53_v11 = vmul.f32 0.5, %v52_v9  ;;  %v80_v15 = vadd.f32 0.024181312, %v79_v13  ;;  %v105_v20 = vmax.f32 %v104_v17, 0.0  ;;  %v95_v26 = vmax.f32 %v94_v19, 0.0  ;;  %v246_v9 = vld [vmem:[%s410_s1 + $0x8] sm:$0xff] }
  0x11   :  { %v254_v17 = vld [vmem:[%s410_s1 + $0x48] sm:$0xff] }
  0x12   :  { %v54_v12 = vmax.f32 %v53_v11, 0.0  ;;  %v81_v18 = vmul.f32 %v80_v15, %v78_v10  ;;  %vm108_vm2 = vcmp.eq.f32.partialorder %v105_v20, inf  ;;  %v111_v45 = vand.u32 2147483648, %v105_v20  ;;  %v249_v11 = vld [vmem:[%s410_s1 + $0x20] sm:$0xff]  ;;  %v251_v15 = vld [vmem:[%s410_s1 + $0x30] sm:$0xff] }
  0x13   :  { %vm110_vm3 = vcmp.eq.f32.partialorder %v105_v20, 0.0  ;;  %vm98_vm4 = vcmp.eq.f32.partialorder %v95_v26, inf  ;;  %v101_v51 = vand.u32 2147483648, %v95_v26  ;;  %vm100_vm5 = vcmp.eq.f32.partialorder %v95_v26, 0.0 }
  0x14   :  { %264 = vrsqrt.f32 %v54_v12  ;;  %vm57_vm0 = vcmp.eq.f32.partialorder %v54_v12, inf  ;;  %v60_v22 = vand.u32 2147483648, %v54_v12  ;;  %v82_v23 = vadd.f32 0.045470025, %v81_v18 }
  0x15   :  { %vm59_vm1 = vcmp.eq.f32.partialorder %v54_v12, 0.0  ;;  %266 = vrsqrt.f32 %v105_v20 }
  0x16   :  { %v83_v28 = vmul.f32 %v82_v23, %v78_v10  ;;  %268 = vrsqrt.f32 %v95_v26  ;;  %v123_v23 = vsub.f32 %v254_v17, %v251_v15 }
  0x18   :  { %v84_v31 = vadd.f32 0.074953005, %v83_v28 }
  0x1a   :  { %v85_v34 = vmul.f32 %v84_v31, %v78_v10  ;;  %v247_v10 = vld [vmem:[%s410_s1 + $0x10] sm:$0xff]  ;;  %v354_v31 = vld [vmem:[%s410_s1 + $0x58] sm:$0xff] }
  0x1c   :  { %v86_v38 = vadd.f32 0.16666752, %v85_v34 }
  0x1e   :  { %v265_v21 = vpop.eup %264  ;;  %v88_v46 = vmul.f32 %v87_v39, %v86_v38 }
  0x1f   :  { %v56_v24 = vmul.f32 %v265_v21, %v54_v12  ;;  %v267_v35 = vpop.eup %266  ;;  %v125_v21 = vsub.f32 %v249_v11, %v246_v9 }
  0x20   :  { %v107_v40 = vmul.f32 %v267_v35, %v105_v20  ;;  %v269_v41 = vpop.eup %268  ;;  %v89_v53 = vadd.f32 %v298_v7, %v88_v46 }
  0x21   :  { %v58_v25 = vsel %vm57_vm0, %v54_v12, %v56_v24  ;;  %v97_v47 = vmul.f32 %v269_v41, %v95_v26  ;;  %v124_v24 = vsub.f32 %v247_v10, %v253_v16 }
  0x22   :  { %v61_v27 = vsel %vm59_vm1, %v60_v22, %v58_v25  ;;  %v109_v48 = vsel %vm108_vm2, %v105_v20, %v107_v40  ;;  %v90_v59 = vsub.f32 1.5707964, %v89_v53 }
  0x23   :  { %v62_v29 = vmul.f32 %v61_v27, %v61_v27  ;;  %v112_v52 = vsel %vm110_vm3, %v111_v45, %v109_v48  ;;  %v99_v54 = vsel %vm98_vm4, %v95_v26, %v97_v47 }
  0x24   :  { %v113_v56 = vmul.f32 2.0, %v112_v52  ;;  %v102_v58 = vsel %vm100_vm5, %v101_v51, %v99_v54 }
  0x25   :  { %v63_v30 = vmul.f32 0.0421632, %v62_v29  ;;  %v71_v44 = vmul.f32 %v62_v29, %v61_v27 }
  0x26   :  { %v114_v61 = vmul.f32 %v113_v56, %v102_v58 }
  0x27   :  { %v64_v32 = vadd.f32 0.024181312, %v63_v30  ;;  %v349_v30 = vld [vmem:[%s410_s1 + $0x38] sm:$0xff] }
  0x29   :  { %v65_v33 = vmul.f32 %v64_v32, %v62_v29 }
  0x2b   :  { %v66_v36 = vadd.f32 0.045470025, %v65_v33 }
  0x2d   :  { %v67_v37 = vmul.f32 %v66_v36, %v62_v29 }
  0x2f   :  { %v68_v42 = vadd.f32 0.074953005, %v67_v37 }
  0x31   :  { %v69_v43 = vmul.f32 %v68_v42, %v62_v29  ;;  %v344_v29 = vld [vmem:[%s410_s1 + $0x18] sm:$0xff] }
  0x33   :  { %v70_v49 = vadd.f32 0.16666752, %v69_v43 }
  0x35   :  { %v72_v50 = vmul.f32 %v71_v44, %v70_v49 }
  0x37   :  { %v73_v55 = vadd.f32 %v72_v50, %v61_v27 }
  0x39   :  { %v74_v57 = vmul.f32 2.0, %v73_v55 }
  0x3b   :  { %v76_v60 = vsub.f32 3.1415927, %v74_v57 }
  0x3d   :  { %v77_v62 = vsel %vm75_vm6, %v76_v60, %v74_v57 }
  0x3e   :  { %v308_v63 = vsel %vm91_vm7, %v77_v62, %v90_v59 }
  0x3f   :  { %vm115_vm8 = vcmp.lt.f32.partialorder %v308_v63, 0.001  ;;  %v126_v3 = vmul.f32 %v308_v63, %v308_v63  ;;  %v318_v4 = vmul.f32 0.5, %v308_v63 }
  0x40   :  { %v116_v0 = vsel %vm115_vm8, 1.0, %v114_v61  ;;  %v138_v1 = vsel %vm115_vm8, 1.0, %v112_v52 }
  0x41   :  { %v117_v2 = vmax.f32 %v116_v0, 1e-07  ;;  %270 = vrcp.f32 %v138_v1  ;;  %v127_v6 = vmul.f32 0.083333336, %v126_v3  ;;  %v140_v13 = vmul.f32 %v318_v4, %v102_v58 }
  0x43   :  { %272 = vrcp.f32 %v117_v2  ;;  %v139_v19 = vsub.f32 1.0, %v127_v6  ;;  %v128_v27 = vadd.f32 0.5, %v127_v6 }
  0x4b   :  { %v271_v5 = vpop.eup %270 }
  0x4c   :  { %v142_v7 = vmul.f32 %v271_v5, %v138_v1 }
  0x4d   :  { %v273_v8 = vpop.eup %272 }
  0x4e   :  { %v119_v12 = vmul.f32 %v273_v8, %v117_v2  ;;  %v143_v14 = vsub.f32 2.0, %v142_v7 }
  0x50   :  { %v120_v18 = vsub.f32 2.0, %v119_v12  ;;  %v144_v20 = vmul.f32 %v271_v5, %v143_v14 }
  0x52   :  { %v121_v22 = vmul.f32 %v273_v8, %v120_v18  ;;  %v145_v25 = vmul.f32 %v144_v20, %v140_v13  ;;  %v196_v20 = vld [vmem:[%s411_s0] sm:$0xff] }
  0x54   :  { %v122_v26 = vmul.f32 0.5, %v121_v22  ;;  %v146_v28 = vsel %vm115_vm8, %v139_v19, %v145_v25  ;;  %v260_v25 = vld [vmem:[%s411_s0 + $0x10] sm:$0xff] }
  0x55   :  { %v152_v36 = vsub.f32 1.0, %v146_v28  ;;  %v163_v37 = vmul.f32 %v344_v29, %v146_v28  ;;  %v168_v38 = vmul.f32 %v349_v30, %v146_v28  ;;  %v173_v2 = vmul.f32 %v354_v31, %v146_v28 }
  0x56   :  { %v129_v32 = vmul.f32 %v122_v26, %v308_v63  ;;  %v134_v33 = vmul.f32 %v123_v23, %v122_v26  ;;  %v135_v34 = vmul.f32 %v124_v24, %v122_v26  ;;  %v136_v35 = vmul.f32 %v125_v21, %v122_v26  ;;  %v261_v26 = vld [vmem:[%s411_s0 + $0x18] sm:$0xff] }
  0x58   :  { %v130_v39 = vsel %vm115_vm8, %v128_v27, %v129_v32  ;;  %v147_v40 = vmul.f32 %v344_v29, %v134_v33  ;;  %v148_v41 = vmul.f32 %v349_v30, %v135_v34  ;;  %v150_v42 = vmul.f32 %v354_v31, %v136_v35 }
  0x59   :  { %v131_v43 = vmul.f32 %v130_v39, %v123_v23  ;;  %v132_v44 = vmul.f32 %v130_v39, %v124_v24  ;;  %v133_v45 = vmul.f32 %v130_v39, %v125_v21  ;;  %v154_v46 = vmul.f32 %v354_v31, %v135_v34  ;;  %v259_v24 = vld [vmem:[%s411_s0 + $0x8] sm:$0xff] }
  0x5a   :  { %v149_v47 = vadd.f32 %v148_v41, %v147_v40  ;;  %v155_v48 = vmul.f32 %v349_v30, %v136_v35  ;;  %v157_v49 = vmul.f32 %v344_v29, %v136_v35  ;;  %v158_v50 = vmul.f32 %v354_v31, %v134_v33 }
  0x5b   :  { %v160_v51 = vmul.f32 %v349_v30, %v134_v33  ;;  %v161_v52 = vmul.f32 %v344_v29, %v135_v34  ;;  %v178_v53 = vmul.f32 %v354_v31, %v132_v44  ;;  %v179_v54 = vmul.f32 %v349_v30, %v133_v45 }
  0x5c   :  { %v151_v55 = vadd.f32 %v150_v42, %v149_v47  ;;  %v156_v56 = vsub.f32 %v154_v46, %v155_v48  ;;  %v159_v57 = vsub.f32 %v157_v49, %v158_v50  ;;  %v183_v58 = vmul.f32 %v344_v29, %v133_v45 }
  0x5d   :  { %v162_v59 = vsub.f32 %v160_v51, %v161_v52  ;;  %v180_v60 = vsub.f32 %v178_v53, %v179_v54  ;;  %v184_v61 = vmul.f32 %v354_v31, %v131_v43  ;;  %v188_v62 = vmul.f32 %v349_v30, %v131_v43 }
  0x5e   :  { %v153_v0 = vmul.f32 %v152_v36, %v151_v55  ;;  %v166_v1 = vmul.f32 %v156_v56, %v318_v4  ;;  %v189_v3 = vmul.f32 %v344_v29, %v132_v44  ;;  %v171_v5 = vmul.f32 %v159_v57, %v318_v4 }
  0x5f   :  { %v176_v6 = vmul.f32 %v162_v59, %v318_v4  ;;  %v181_v7 = vmul.f32 0.5, %v180_v60  ;;  %v185_v8 = vsub.f32 %v183_v58, %v184_v61 }
  0x60   :  { %v164_v9 = vmul.f32 %v153_v0, %v134_v33  ;;  %v169_v10 = vmul.f32 %v153_v0, %v135_v34  ;;  %v174_v11 = vmul.f32 %v153_v0, %v136_v35  ;;  %v190_v12 = vsub.f32 %v188_v62, %v189_v3  ;;  %v263_v35 = vld [vmem:[%s411_s0 + $0x28] sm:$0xff] }
  0x61   :  { %v182_v13 = vsub.f32 %v344_v29, %v181_v7  ;;  %v186_v14 = vmul.f32 0.5, %v185_v8  ;;  %v206_v34 = vsub.f32 %v261_v26, %v131_v43  ;;  %v212_v40 = vsub.f32 %v263_v35, %v133_v45 }
  0x62   :  { %v165_v15 = vadd.f32 %v164_v9, %v163_v37  ;;  %v170_v16 = vadd.f32 %v169_v10, %v168_v38  ;;  %v175_v17 = vadd.f32 %v174_v11, %v173_v2  ;;  %v191_v18 = vmul.f32 0.5, %v190_v12 }
  0x63   :  { %v187_v19 = vsub.f32 %v349_v30, %v186_v14  ;;  %v262_v30 = vld [vmem:[%s411_s0 + $0x20] sm:$0xff]  ;;  %v218_v63 = vmul.f32 %v206_v34, %v206_v34  ;;  %v222_v48 = vmul.f32 %v212_v40, %v212_v40 }
  0x64   :  { %v167_v4 = vsub.f32 %v165_v15, %v166_v1  ;;  %v172_v21 = vsub.f32 %v170_v16, %v171_v5  ;;  %v177_v22 = vsub.f32 %v175_v17, %v176_v6  ;;  %v192_v23 = vsub.f32 %v354_v31, %v191_v18 }
  0x65   :  { %v209_v36 = vsub.f32 %v262_v30, %v132_v44 }
  0x66   :  { %v193_v27 = vsel %vm115_vm8, %v182_v13, %v167_v4  ;;  %v194_v28 = vsel %vm115_vm8, %v187_v19, %v172_v21  ;;  %v195_v29 = vsel %vm115_vm8, %v192_v23, %v177_v22 }
  0x67   :  { %v197_v31 = vsub.f32 %v196_v20, %v193_v27  ;;  %v200_v32 = vsub.f32 %v259_v24, %v194_v28  ;;  %v203_v33 = vsub.f32 %v260_v25, %v195_v29  ;;  %v220_v46 = vmul.f32 %v209_v36, %v209_v36 }
  0x69   :  { %v213_v37 = vmul.f32 %v197_v31, %v197_v31  ;;  %v214_v38 = vmul.f32 %v200_v32, %v200_v32  ;;  %v216_v39 = vmul.f32 %v203_v33, %v203_v33 }
  0x6b   :  { %v215_v41 = vadd.f32 %v214_v38, %v213_v37 }
  0x6d   :  { %v217_v42 = vadd.f32 %v216_v39, %v215_v41 }
  0x6f   :  { %v219_v47 = vadd.f32 %v218_v63, %v217_v42 }
  0x71   :  { %v221_v49 = vadd.f32 %v220_v46, %v219_v47 }
  0x73   :  { %v223_v50 = vadd.f32 %v222_v48, %v221_v49 }
  0x75   :  { %225 = vst [vmem:[%s412_s2] sm:$0xff] %v223_v50 }

</bundles_post_ra>
